<compile_context>
chip_gen: v5e
topology: v5e:2x2
jax: 0.10.0
libtpu: 0.0.40
codegen_flags: <defaults>
</compile_context>

<pallas_src>
import math
from dataclasses import dataclass
from typing import Optional, Union

import jax
import jax.numpy as jnp
from jax import lax
from jax.experimental import pallas as pl
from jax.experimental.pallas import tpu as pltpu

FP16_MIN = float(jnp.finfo(jnp.float16).min)   # -65504.0 (score_to_mask threshold base)
FP32_MIN = float(jnp.finfo(jnp.float32).min)   # masked_fill value for f32 scores


@dataclass(frozen=True)
class LocalSettings:
    k: int
    initial_k: int
    apply_after_softmax: bool


@dataclass(frozen=True)
class SparseSettings:
    k: int
    apply_after_softmax: bool
    reallocate_to_mean: bool


Settings = Union[SparseSettings, LocalSettings]


# ----------------------------- in-kernel math ------------------------------

def _softmax_last(x):
    m = jnp.max(x, axis=-1, keepdims=True)
    e = jnp.exp(x - m)
    return e / jnp.sum(e, axis=-1, keepdims=True)


def _reverse_count_ge(mask_f32):
    """rc[p, i] = number of True entries at positions >= i (per row).

    For small / unaligned S this uses a tiny (S, S) helper matmul; for
    lane-aligned S it is a log2(S) shift-add scan built from pltpu.roll, so
    it never materializes an (S, S) buffer or does S^2 MXU work.
    """
    P, S = mask_f32.shape
    if S % 128 != 0 or S <= 512:
        # TODO(synk): for long sequences pad S to a multiple of 128 upstream so
        # the roll-based scan is used instead of this (S,S) helper.
        tri = (lax.broadcasted_iota(jnp.int32, (S, S), 0)
               >= lax.broadcasted_iota(jnp.int32, (S, S), 1)).astype(jnp.float32)
        return jnp.dot(mask_f32, tri, preferred_element_type=jnp.float32)
    # Forward inclusive cumsum via Hillis-Steele shift-add on the lane axis.
    # Wrapped / padded lanes pulled in by the rotation are discarded by the
    # `col >= shift` mask, so only in-bounds acc[i - shift] values contribute.
    col = lax.broadcasted_iota(jnp.int32, (P, S), 1)
    acc = mask_f32
    shift = 1
    while shift < S:
        rolled = pltpu.roll(acc, shift=shift, axis=1)          # rolled[i] = acc[i - shift]
        acc = acc + jnp.where(col >= shift, rolled, 0.0)
        shift *= 2
    total = jnp.sum(mask_f32, axis=-1, keepdims=True)
    return total - acc + mask_f32                               # suffix count


def _sparse_softmax_2d(scores, k, apply_after_softmax, reallocate_to_mean, n_valid_rows):
    """scores: (Pp, S) f32.  Pp = padded heads-per-kv, S = seq (lane axis)."""
    P_pad, S = scores.shape
    weights = _softmax_last(scores)
    if k >= S:
        return weights
    # group sum over the *real* heads only (padded rows are zeroed out).
    if n_valid_rows < P_pad:
        row_valid = lax.broadcasted_iota(jnp.int32, (P_pad, 1), 0) < n_valid_rows
        gsum_src = jnp.where(row_valid, weights, 0.0)
    else:
        gsum_src = weights
    group_sum = jnp.sum(gsum_src, axis=0, keepdims=True)              # (1, S)
    group_sum = jnp.where(jnp.isnan(group_sum), FP32_MIN, group_sum)  # nan_to_num(fmin)

    # top-k mask along seq.  k is static -> unrolled argmax sweep with
    # lowest-index tie-break (matches lax.top_k / stable torch.topk).
    # TODO(synk): for large static k a value-threshold binary search
    # (count-above-threshold) bounds the serial XLU chain at ~32 reductions.
    col = lax.broadcasted_iota(jnp.int32, (1, S), 1)
    vals, mask = group_sum, jnp.zeros((1, S), dtype=jnp.bool_)
    for _ in range(k):
        m = jnp.max(vals, axis=-1, keepdims=True)
        first = jnp.min(jnp.where(vals == m, col, S), axis=-1, keepdims=True)
        sel = col == first
        mask = jnp.logical_or(mask, sel)
        vals = jnp.where(sel, -jnp.inf, vals)
    mask = jnp.broadcast_to(mask, (P_pad, S))

    if not apply_after_softmax:
        return _softmax_last(jnp.where(mask, scores, FP32_MIN))
    weights = weights * mask
    if reallocate_to_mean:
        # NOTE: like the torch module, this divides by the removed count and
        # will produce non-finite weights if it is zero.
        removed = jnp.logical_and(jnp.logical_not(mask), 0.5 * FP16_MIN < scores)
        rem_f = removed.astype(jnp.float32)
        weights = weights + rem_f * (1.0 - jnp.sum(weights, -1, keepdims=True)) / jnp.sum(
            rem_f, -1, keepdims=True)
    return weights


def _local_softmax_2d(scores, k, initial_k, apply_after_softmax):
    """scores: (Pp, S) f32."""
    mask = (0.5 * FP16_MIN) < scores                       # score_to_mask
    rc = _reverse_count_ge(mask.astype(jnp.float32))       # causal_index + 1 for kept tokens
    index = jnp.where(mask, rc - 1.0, -1.0)
    max_index = jnp.max(index, axis=-1, keepdims=True)
    local_mask = jnp.logical_or(index < float(k - initial_k),
                                (max_index - float(initial_k)) < index)
    # keep the softmax math in f32 (FP32_MIN fills would break in bf16).
    if apply_after_softmax:
        return _softmax_last(scores) * local_mask.astype(jnp.float32)
    return _softmax_last(jnp.where(local_mask, scores, FP32_MIN))


def _make_kernel(settings: Settings, scale: float, n_valid_rows: int, with_weights: bool):
    def _compute(q_ref, k_ref, v_ref, lm_ref):
        q = q_ref[...] * scale                                      # native dtype (matches torch .div)
        # QK^T in the native input dtype (bf16 stays bf16 on the MXU), f32 accumulation.
        scores = lax.dot_general(q, k_ref[...], (((1,), (1,)), ((), ())),
                                 preferred_element_type=jnp.float32)
        scores = scores + lm_ref[...].astype(jnp.float32)           # (Pp, S) f32
        if isinstance(settings, SparseSettings):
            w = _sparse_softmax_2d(scores, settings.k, settings.apply_after_softmax,
                                   settings.reallocate_to_mean, n_valid_rows)
        else:
            w = _local_softmax_2d(scores, settings.k, settings.initial_k,
                                  settings.apply_after_softmax)
        # torch casts weights to value.dtype before `weights @ value`.
        w_cast = w.astype(v_ref.dtype)
        out = jnp.dot(w_cast, v_ref[...], preferred_element_type=jnp.float32)
        return w_cast, out

    if with_weights:
        def kernel(q_ref, k_ref, v_ref, lm_ref, out_ref, w_ref):
            w, out = _compute(q_ref, k_ref, v_ref, lm_ref)
            out_ref[...] = out.astype(out_ref.dtype)
            w_ref[...] = w.astype(w_ref.dtype)
    else:
        def kernel(q_ref, k_ref, v_ref, lm_ref, out_ref):
            _, out = _compute(q_ref, k_ref, v_ref, lm_ref)
            out_ref[...] = out.astype(out_ref.dtype)
    return kernel


# -------------------------------- wrapper ----------------------------------

def _vmem_limit_bytes(q_dt, k_dt, v_dt, lm_dt, out_dt, P_pad, S, D, with_weights):
    isz = lambda dt: jnp.dtype(dt).itemsize
    blocks = (P_pad * D * isz(q_dt) + S * D * (isz(k_dt) + isz(v_dt))
              + P_pad * S * isz(lm_dt) + P_pad * D * isz(out_dt))
    if with_weights:
        blocks += P_pad * S * isz(out_dt)
    vmem = 2 * blocks                              # double-buffered pipeline copies
    vmem += 12 * P_pad * S * 4 + P_pad * D * 4     # f32 intermediates (scores/weights/masks/scan)
    vmem += 2 << 20                                # compiler-internal scratch slack
    return int(min(max(vmem, 32 << 20), 100 << 20))


def sparse_attention_forward(settings: Settings, query, key, value, logmask,
                             *, return_weights: bool = True):
    """Returns (output (B, H, 1, D), weights (B, H, 1, S) or None)."""
    B, H, qlen, D = query.shape
    assert qlen == 1
    Bk, G, S, Dk = key.shape
    assert Bk == B and Dk == D and value.shape == key.shape
    P = H // G
    assert P * G == H
    P_pad = max(8, -(-P // 8) * 8)                 # full (8,*) sublane tiles, unmasked stores

    q = query.reshape(B, G, P, D)
    lm = logmask.reshape(B, G, P, S)
    if P_pad != P:
        pad = ((0, 0), (0, 0), (0, P_pad - P), (0, 0))
        q = jnp.pad(q, pad)                        # zero rows; results are sliced off
        lm = jnp.pad(lm, pad)
    q = q.reshape(B * G, P_pad, D)
    lm = lm.reshape(B * G, P_pad, S)
    k = key.reshape(B * G, S, D)
    v = value.reshape(B * G, S, D)

    out_dtype = value.dtype
    kernel = _make_kernel(settings, 1.0 / math.sqrt(D), P, return_weights)

    out_spec = pl.BlockSpec((None, P_pad, D), lambda i: (i, 0, 0))
    if return_weights:
        out_shape = (jax.ShapeDtypeStruct((B * G, P_pad, D), out_dtype),
                     jax.ShapeDtypeStruct((B * G, P_pad, S), out_dtype))
        out_specs = (out_spec, pl.BlockSpec((None, P_pad, S), lambda i: (i, 0, 0)))
    else:
        out_shape = jax.ShapeDtypeStruct((B * G, P_pad, D), out_dtype)
        out_specs = out_spec

    vmem_limit = _vmem_limit_bytes(q.dtype, k.dtype, v.dtype, lm.dtype, out_dtype,
                                   P_pad, S, D, return_weights)

    result = pl.pallas_call(
        kernel,
        out_shape=out_shape,
        grid=(B * G,),
        in_specs=[
            pl.BlockSpec((None, P_pad, D), lambda i: (i, 0, 0)),   # q
            pl.BlockSpec((None, S, D), lambda i: (i, 0, 0)),       # k (native dtype)
            pl.BlockSpec((None, S, D), lambda i: (i, 0, 0)),       # v (native dtype)
            pl.BlockSpec((None, P_pad, S), lambda i: (i, 0, 0)),   # logmask
        ],
        out_specs=out_specs,
        compiler_params=pltpu.CompilerParams(
            dimension_semantics=("parallel",),
            vmem_limit_bytes=vmem_limit),
    )(q, k, v, lm)

    if return_weights:
        out, w = result
        w = w[:, :P, :].reshape(B, H, 1, S)
    else:
        out, w = result, None
    out = out[:, :P, :].reshape(B, H, 1, D)
    return out, w
    # TODO(synk): for HBM-bound long-context decode, quantize the K/V cache
    # (int8 on v5e/v6e, fp8 on v7x) and dequantize per tile -- changes numerics,
    # so it is not applied here.


# --------------------------- pure-JAX reference -----------------------------

def _ref_forward(settings: Settings, query, key, value, logmask):
    B, H, _, D = query.shape
    _, G, S, _ = key.shape
    P = H // G
    q = query.reshape(B, G, P, 1, D) / math.sqrt(D)
    k = key.reshape(B, G, 1, S, D)
    v = value.reshape(B, G, 1, S, D)
    lm = logmask.reshape(B, G, P, 1, S)
    scores = jnp.matmul(q, jnp.swapaxes(k, -1, -2)) + lm           # (B,G,P,1,S)
    if isinstance(settings, SparseSettings):
        w = jax.nn.softmax(scores, axis=-1)
        if settings.k < S:
            gs = jnp.sum(w, axis=2, keepdims=True)
            gs = jnp.where(jnp.isnan(gs), FP32_MIN, gs)            # nan_to_num(fmin)
            _, idx = lax.top_k(gs, settings.k)
            mask = jnp.any(jax.nn.one_hot(idx, S, dtype=jnp.float32) > 0, axis=-2)
            mask = jnp.broadcast_to(mask, scores.shape)
            if not settings.apply_after_softmax:
                w = jax.nn.softmax(jnp.where(mask, scores, FP32_MIN), axis=-1)
            else:
                w = w * mask
                if settings.reallocate_to_mean:
                    removed = jnp.logical_and(~mask, 0.5 * FP16_MIN < scores)
                    rf = removed.astype(jnp.float32)
                    w = w + rf * (1 - jnp.sum(w, -1, keepdims=True)) / jnp.sum(
                        rf, -1, keepdims=True)
    else:
        m = 0.5 * FP16_MIN < scores
        rc = jnp.flip(jnp.cumsum(jnp.flip(m, -1), axis=-1), -1)
        index = jnp.where(m, rc - 1, -1)
        max_index = jnp.max(index, -1, keepdims=True)
        lmask = (index < settings.k - settings.initial_k) | (
            max_index - settings.initial_k < index)
        if settings.apply_after_softmax:
            w = jax.nn.softmax(scores, -1) * lmask
        else:
            w = jax.nn.softmax(jnp.where(lmask, scores, FP32_MIN), -1)
    out = jnp.matmul(w, v)
    return out.reshape(B, H, 1, D), w.reshape(B, H, 1, S)


# ---------------------------------- main ------------------------------------

if __name__ == "__main__":
    root = jax.random.PRNGKey(0)

    def make_inputs(key_, B, G, P, S, D, dtype):
        H = G * P
        kq, kk, kv = jax.random.split(key_, 3)
        query = jax.random.normal(kq, (B, H, 1, D), dtype)
        k = jax.random.normal(kk, (B, G, S, D), dtype)
        v = jax.random.normal(kv, (B, G, S, D), dtype)
        logmask = jnp.zeros((B, H, 1, S), dtype).at[..., 0].set(
            jnp.asarray(FP16_MIN, dtype))                          # mask oldest token
        return query, k, v, logmask

    # --- small shapes: all four softmax variants, tight check ---------------
    q, k, v, lm = make_inputs(jax.random.fold_in(root, 0),
                              B=2, G=2, P=2, S=8, D=32, dtype=jnp.float32)
    for st in (SparseSettings(k=4, apply_after_softmax=True, reallocate_to_mean=True),
               SparseSettings(k=4, apply_after_softmax=False, reallocate_to_mean=False),
               LocalSettings(k=4, initial_k=1, apply_after_softmax=True),
               LocalSettings(k=4, initial_k=1, apply_after_softmax=False)):
        out, w = sparse_attention_forward(st, q, k, v, lm)
        jax.block_until_ready((out, w))
        ro, rw = _ref_forward(st, q, k, v, lm)
        assert out.shape == (2, 4, 1, 32) and w.shape == (2, 4, 1, 8)
        assert bool(jnp.allclose(out, ro, atol=1e-5, rtol=1e-5)), st
        assert bool(jnp.allclose(w, rw, atol=1e-5, rtol=1e-5)), st

    # --- larger seq: exercises the roll-based suffix count + top-k at scale --
    q, k, v, lm = make_inputs(jax.random.fold_in(root, 1),
                              B=1, G=2, P=4, S=1024, D=64, dtype=jnp.float32)
    for st in (SparseSettings(k=16, apply_after_softmax=True, reallocate_to_mean=True),
               LocalSettings(k=16, initial_k=4, apply_after_softmax=True),
               LocalSettings(k=16, initial_k=4, apply_after_softmax=False)):
        out, w = sparse_attention_forward(st, q, k, v, lm)
        jax.block_until_ready((out, w))
        ro, rw = _ref_forward(st, q, k, v, lm)
        assert bool(jnp.allclose(out, ro, atol=1e-3, rtol=1e-3)), st
        assert bool(jnp.allclose(w, rw, atol=1e-3, rtol=1e-3)), st

    # --- output-only variant (drops the weights store / extra HBM traffic) ---
    st = LocalSettings(k=16, initial_k=4, apply_after_softmax=True)
    out_only, w_none = sparse_attention_forward(st, q, k, v, lm, return_weights=False)
    jax.block_until_ready(out_only)
    ro, _ = _ref_forward(st, q, k, v, lm)
    assert w_none is None
    assert bool(jnp.allclose(out_only, ro, atol=1e-3, rtol=1e-3))

    # --- bf16 inputs stay bf16 on the MXU (no f32 upcast of K/V) -------------
    qb, kb, vb, lmb = make_inputs(jax.random.fold_in(root, 2),
                                  B=1, G=2, P=4, S=1024, D=64, dtype=jnp.bfloat16)
    st = LocalSettings(k=16, initial_k=4, apply_after_softmax=True)
    out_b, w_b = sparse_attention_forward(st, qb, kb, vb, lmb)
    jax.block_until_ready((out_b, w_b))
    ro, _ = _ref_forward(st, qb.astype(jnp.float32), kb.astype(jnp.float32),
                         vb.astype(jnp.float32), lmb.astype(jnp.float32))
    assert out_b.dtype == jnp.bfloat16 and w_b.dtype == jnp.bfloat16
    assert bool(jnp.allclose(out_b.astype(jnp.float32), ro, atol=5e-2, rtol=5e-2))

    # TODO(synk): debug_masks (Python-side list of boolean masks) is host-side
    # bookkeeping and is not materialized by the kernel.
    print("KERNEL_OK")
</pallas_src>

<mosaic_0001>
module attributes {stable_mosaic.version = 11 : i64} {
  func.func @kernel(%arg0: i32, %arg1: memref<1x8x32xf32, #tpu.memory_space<vmem>>, %arg2: memref<1x8x32xf32, #tpu.memory_space<vmem>>, %arg3: memref<1x8x32xf32, #tpu.memory_space<vmem>>, %arg4: memref<1x8x8xf32, #tpu.memory_space<vmem>>, %arg5: memref<1x8x32xf32, #tpu.memory_space<vmem>>, %arg6: memref<1x8x8xf32, #tpu.memory_space<vmem>>) attributes {dimension_semantics = [#tpu.dimension_semantics<parallel>], iteration_bounds = array<i64: 4>, scalar_prefetch = 0 : i64, scratch_operands = 0 : i64, tpu.core_type = #tpu.core_type<tc>, window_params = [{transform_indices = @transform_0, window_bounds = array<i64: 1, 8, 32>}, {transform_indices = @transform_1, window_bounds = array<i64: 1, 8, 32>}, {transform_indices = @transform_2, window_bounds = array<i64: 1, 8, 32>}, {transform_indices = @transform_3, window_bounds = array<i64: 1, 8, 8>}, {transform_indices = @transform_4, window_bounds = array<i64: 1, 8, 32>}, {transform_indices = @transform_5, window_bounds = array<i64: 1, 8, 8>}]} {
    %c0 = arith.constant 0 : index
    %c0_0 = arith.constant 0 : index
    %c0_1 = arith.constant 0 : index
    %0 = vector.load %arg1[%c0, %c0_0, %c0_1] : memref<1x8x32xf32, #tpu.memory_space<vmem>>, vector<1x8x32xf32>
    %1 = vector.shape_cast %0 : vector<1x8x32xf32> to vector<8x32xf32>
    %cst = arith.constant 0.176776692 : f32
    %2 = vector.broadcast %cst : f32 to vector<8x32xf32>
    %3 = arith.mulf %1, %2 : vector<8x32xf32>
    %c0_2 = arith.constant 0 : index
    %c0_3 = arith.constant 0 : index
    %c0_4 = arith.constant 0 : index
    %4 = vector.load %arg2[%c0_2, %c0_3, %c0_4] : memref<1x8x32xf32, #tpu.memory_space<vmem>>, vector<1x8x32xf32>
    %5 = vector.shape_cast %4 : vector<1x8x32xf32> to vector<8x32xf32>
    %cst_5 = arith.constant dense<0.000000e+00> : vector<8x8xf32>
    %6 = tpu.matmul %3, %5, %cst_5 {dimension_numbers = #tpu.dot_dimension_numbers<[1], [1], [0], [0], [0, 0, 1, 0], [], []>} : vector<8x32xf32>, vector<8x32xf32>, vector<8x8xf32> -> vector<8x8xf32>
    %c0_6 = arith.constant 0 : index
    %c0_7 = arith.constant 0 : index
    %c0_8 = arith.constant 0 : index
    %7 = vector.load %arg4[%c0_6, %c0_7, %c0_8] : memref<1x8x8xf32, #tpu.memory_space<vmem>>, vector<1x8x8xf32>
    %8 = vector.shape_cast %7 : vector<1x8x8xf32> to vector<8x8xf32>
    %9 = arith.addf %6, %8 : vector<8x8xf32>
    %cst_9 = arith.constant dense<0xFF800000> : vector<8xf32>
    %10 = vector.multi_reduction <maximumf>, %9, %cst_9 [1] : vector<8x8xf32> to vector<8xf32>
    %11 = vector.shape_cast %10 : vector<8xf32> to vector<8x1xf32>
    %12 = vector.broadcast %11 : vector<8x1xf32> to vector<8x8xf32>
    %13 = arith.subf %9, %12 : vector<8x8xf32>
    %14 = math.exp %13 : vector<8x8xf32>
    %cst_10 = arith.constant dense<0.000000e+00> : vector<8xf32>
    %15 = vector.multi_reduction <add>, %14, %cst_10 [1] : vector<8x8xf32> to vector<8xf32>
    %16 = vector.shape_cast %15 : vector<8xf32> to vector<8x1xf32>
    %17 = vector.broadcast %16 : vector<8x1xf32> to vector<8x8xf32>
    %18 = arith.divf %14, %17 : vector<8x8xf32>
    %19 = tpu.iota {dimensions = array<i32: 0>} : vector<8x1xi32>
    %c2_i32 = arith.constant 2 : i32
    %20 = vector.broadcast %c2_i32 : i32 to vector<8x1xi32>
    %21 = arith.cmpi slt, %19, %20 : vector<8x1xi32>
    %cst_11 = arith.constant 0.000000e+00 : f32
    %22 = vector.shape_cast %21 : vector<8x1xi1> to vector<8x1xi1>
    %23 = vector.broadcast %22 : vector<8x1xi1> to vector<8x8xi1>
    %24 = vector.broadcast %cst_11 : f32 to vector<8x8xf32>
    %25 = arith.select %23, %18, %24 : vector<8x8xi1>, vector<8x8xf32>
    %cst_12 = arith.constant dense<0.000000e+00> : vector<8xf32>
    %26 = vector.multi_reduction <add>, %25, %cst_12 [0] : vector<8x8xf32> to vector<8xf32>
    %27 = vector.shape_cast %26 : vector<8xf32> to vector<1x8xf32>
    %28 = arith.cmpf one, %27, %27 : vector<1x8xf32>
    %cst_13 = arith.constant -3.40282347E+38 : f32
    %29 = vector.broadcast %cst_13 : f32 to vector<1x8xf32>
    %30 = arith.select %28, %29, %27 : vector<1x8xi1>, vector<1x8xf32>
    %31 = tpu.iota {dimensions = array<i32: 1>} : vector<1x8xi32>
    %false = arith.constant false
    %32 = vector.broadcast %false : i1 to vector<1x8xi1>
    %cst_14 = arith.constant dense<0xFF800000> : vector<1xf32>
    %33 = vector.multi_reduction <maximumf>, %30, %cst_14 [1] : vector<1x8xf32> to vector<1xf32>
    %34 = vector.shape_cast %33 : vector<1xf32> to vector<1x1xf32>
    %35 = vector.broadcast %34 : vector<1x1xf32> to vector<1x8xf32>
    %36 = arith.cmpf oeq, %30, %35 : vector<1x8xf32>
    %c8_i32 = arith.constant 8 : i32
    %37 = vector.broadcast %c8_i32 : i32 to vector<1x8xi32>
    %38 = arith.select %36, %31, %37 : vector<1x8xi1>, vector<1x8xi32>
    %cst_15 = arith.constant dense<2147483647> : vector<1xi32>
    %39 = vector.multi_reduction <minsi>, %38, %cst_15 [1] : vector<1x8xi32> to vector<1xi32>
    %40 = vector.shape_cast %39 : vector<1xi32> to vector<1x1xi32>
    %41 = vector.broadcast %40 : vector<1x1xi32> to vector<1x8xi32>
    %42 = arith.cmpi eq, %31, %41 : vector<1x8xi32>
    %43 = arith.ori %32, %42 : vector<1x8xi1>
    %cst_16 = arith.constant 0xFF800000 : f32
    %44 = vector.broadcast %cst_16 : f32 to vector<1x8xf32>
    %45 = arith.select %42, %44, %30 : vector<1x8xi1>, vector<1x8xf32>
    %cst_17 = arith.constant dense<0xFF800000> : vector<1xf32>
    %46 = vector.multi_reduction <maximumf>, %45, %cst_17 [1] : vector<1x8xf32> to vector<1xf32>
    %47 = vector.shape_cast %46 : vector<1xf32> to vector<1x1xf32>
    %48 = vector.broadcast %47 : vector<1x1xf32> to vector<1x8xf32>
    %49 = arith.cmpf oeq, %45, %48 : vector<1x8xf32>
    %c8_i32_18 = arith.constant 8 : i32
    %50 = vector.broadcast %c8_i32_18 : i32 to vector<1x8xi32>
    %51 = arith.select %49, %31, %50 : vector<1x8xi1>, vector<1x8xi32>
    %cst_19 = arith.constant dense<2147483647> : vector<1xi32>
    %52 = vector.multi_reduction <minsi>, %51, %cst_19 [1] : vector<1x8xi32> to vector<1xi32>
    %53 = vector.shape_cast %52 : vector<1xi32> to vector<1x1xi32>
    %54 = vector.broadcast %53 : vector<1x1xi32> to vector<1x8xi32>
    %55 = arith.cmpi eq, %31, %54 : vector<1x8xi32>
    %56 = arith.ori %43, %55 : vector<1x8xi1>
    %cst_20 = arith.constant 0xFF800000 : f32
    %57 = vector.broadcast %cst_20 : f32 to vector<1x8xf32>
    %58 = arith.select %55, %57, %45 : vector<1x8xi1>, vector<1x8xf32>
    %cst_21 = arith.constant dense<0xFF800000> : vector<1xf32>
    %59 = vector.multi_reduction <maximumf>, %58, %cst_21 [1] : vector<1x8xf32> to vector<1xf32>
    %60 = vector.shape_cast %59 : vector<1xf32> to vector<1x1xf32>
    %61 = vector.broadcast %60 : vector<1x1xf32> to vector<1x8xf32>
    %62 = arith.cmpf oeq, %58, %61 : vector<1x8xf32>
    %c8_i32_22 = arith.constant 8 : i32
    %63 = vector.broadcast %c8_i32_22 : i32 to vector<1x8xi32>
    %64 = arith.select %62, %31, %63 : vector<1x8xi1>, vector<1x8xi32>
    %cst_23 = arith.constant dense<2147483647> : vector<1xi32>
    %65 = vector.multi_reduction <minsi>, %64, %cst_23 [1] : vector<1x8xi32> to vector<1xi32>
    %66 = vector.shape_cast %65 : vector<1xi32> to vector<1x1xi32>
    %67 = vector.broadcast %66 : vector<1x1xi32> to vector<1x8xi32>
    %68 = arith.cmpi eq, %31, %67 : vector<1x8xi32>
    %69 = arith.ori %56, %68 : vector<1x8xi1>
    %cst_24 = arith.constant 0xFF800000 : f32
    %70 = vector.broadcast %cst_24 : f32 to vector<1x8xf32>
    %71 = arith.select %68, %70, %58 : vector<1x8xi1>, vector<1x8xf32>
    %cst_25 = arith.constant dense<0xFF800000> : vector<1xf32>
    %72 = vector.multi_reduction <maximumf>, %71, %cst_25 [1] : vector<1x8xf32> to vector<1xf32>
    %73 = vector.shape_cast %72 : vector<1xf32> to vector<1x1xf32>
    %74 = vector.broadcast %73 : vector<1x1xf32> to vector<1x8xf32>
    %75 = arith.cmpf oeq, %71, %74 : vector<1x8xf32>
    %c8_i32_26 = arith.constant 8 : i32
    %76 = vector.broadcast %c8_i32_26 : i32 to vector<1x8xi32>
    %77 = arith.select %75, %31, %76 : vector<1x8xi1>, vector<1x8xi32>
    %cst_27 = arith.constant dense<2147483647> : vector<1xi32>
    %78 = vector.multi_reduction <minsi>, %77, %cst_27 [1] : vector<1x8xi32> to vector<1xi32>
    %79 = vector.shape_cast %78 : vector<1xi32> to vector<1x1xi32>
    %80 = vector.broadcast %79 : vector<1x1xi32> to vector<1x8xi32>
    %81 = arith.cmpi eq, %31, %80 : vector<1x8xi32>
    %82 = arith.ori %69, %81 : vector<1x8xi1>
    %83 = vector.shape_cast %82 : vector<1x8xi1> to vector<1x8xi1>
    %84 = vector.broadcast %83 : vector<1x8xi1> to vector<8x8xi1>
    %85 = arith.extui %84 : vector<8x8xi1> to vector<8x8xi32>
    %86 = arith.sitofp %85 : vector<8x8xi32> to vector<8x8xf32>
    %87 = arith.mulf %18, %86 : vector<8x8xf32>
    %cst_28 = arith.constant dense<true> : vector<8x8xi1>
    %88 = arith.xori %84, %cst_28 : vector<8x8xi1>
    %cst_29 = arith.constant -3.275200e+04 : f32
    %89 = vector.broadcast %cst_29 : f32 to vector<8x8xf32>
    %90 = arith.cmpf ogt, %9, %89 : vector<8x8xf32>
    %91 = arith.andi %88, %90 : vector<8x8xi1>
    %92 = arith.extui %91 : vector<8x8xi1> to vector<8x8xi32>
    %93 = arith.sitofp %92 : vector<8x8xi32> to vector<8x8xf32>
    %cst_30 = arith.constant dense<0.000000e+00> : vector<8xf32>
    %94 = vector.multi_reduction <add>, %87, %cst_30 [1] : vector<8x8xf32> to vector<8xf32>
    %95 = vector.shape_cast %94 : vector<8xf32> to vector<8x1xf32>
    %cst_31 = arith.constant 1.000000e+00 : f32
    %96 = vector.broadcast %cst_31 : f32 to vector<8x1xf32>
    %97 = arith.subf %96, %95 : vector<8x1xf32>
    %98 = vector.broadcast %97 : vector<8x1xf32> to vector<8x8xf32>
    %99 = arith.mulf %93, %98 : vector<8x8xf32>
    %cst_32 = arith.constant dense<0.000000e+00> : vector<8xf32>
    %100 = vector.multi_reduction <add>, %93, %cst_32 [1] : vector<8x8xf32> to vector<8xf32>
    %101 = vector.shape_cast %100 : vector<8xf32> to vector<8x1xf32>
    %102 = vector.broadcast %101 : vector<8x1xf32> to vector<8x8xf32>
    %103 = arith.divf %99, %102 : vector<8x8xf32>
    %104 = arith.addf %87, %103 : vector<8x8xf32>
    %c0_33 = arith.constant 0 : index
    %c0_34 = arith.constant 0 : index
    %c0_35 = arith.constant 0 : index
    %105 = vector.load %arg3[%c0_33, %c0_34, %c0_35] : memref<1x8x32xf32, #tpu.memory_space<vmem>>, vector<1x8x32xf32>
    %106 = vector.shape_cast %105 : vector<1x8x32xf32> to vector<8x32xf32>
    %cst_36 = arith.constant dense<0.000000e+00> : vector<8x32xf32>
    %107 = tpu.matmul %104, %106, %cst_36 {dimension_numbers = #tpu.dot_dimension_numbers<[1], [0], [0], [1], [0, 0, 1, 1], [], []>} : vector<8x8xf32>, vector<8x32xf32>, vector<8x32xf32> -> vector<8x32xf32>
    %c0_37 = arith.constant 0 : index
    %c0_38 = arith.constant 0 : index
    %c0_39 = arith.constant 0 : index
    %108 = vector.load %arg5[%c0_37, %c0_38, %c0_39] : memref<1x8x32xf32, #tpu.memory_space<vmem>>, vector<1x8x32xf32>
    %109 = vector.shape_cast %108 : vector<1x8x32xf32> to vector<8x32xf32>
    %110 = vector.shape_cast %107 : vector<8x32xf32> to vector<1x8x32xf32>
    tpu.vector_store %arg5[%c0_37, %c0_38, %c0_39], %110 {strides = array<i32>} : memref<1x8x32xf32, #tpu.memory_space<vmem>>, vector<1x8x32xf32>,
    %c0_40 = arith.constant 0 : index
    %c0_41 = arith.constant 0 : index
    %c0_42 = arith.constant 0 : index
    %111 = vector.load %arg6[%c0_40, %c0_41, %c0_42] : memref<1x8x8xf32, #tpu.memory_space<vmem>>, vector<1x8x8xf32>
    %112 = vector.shape_cast %111 : vector<1x8x8xf32> to vector<8x8xf32>
    %113 = vector.shape_cast %104 : vector<8x8xf32> to vector<1x8x8xf32>
    tpu.vector_store %arg6[%c0_40, %c0_41, %c0_42], %113 {strides = array<i32>} : memref<1x8x8xf32, #tpu.memory_space<vmem>>, vector<1x8x8xf32>,
    return
  }
  func.func @transform_0(%arg0: i32) -> (i32, i32, i32) {
    %c0_i32 = arith.constant 0 : i32
    %c0_i32_0 = arith.constant 0 : i32
    %c0_i32_1 = arith.constant 0 : i32
    return %arg0, %c0_i32, %c0_i32_0 : i32, i32, i32
  }
  func.func @transform_1(%arg0: i32) -> (i32, i32, i32) {
    %c0_i32 = arith.constant 0 : i32
    %c0_i32_0 = arith.constant 0 : i32
    %c0_i32_1 = arith.constant 0 : i32
    return %arg0, %c0_i32, %c0_i32_0 : i32, i32, i32
  }
  func.func @transform_2(%arg0: i32) -> (i32, i32, i32) {
    %c0_i32 = arith.constant 0 : i32
    %c0_i32_0 = arith.constant 0 : i32
    %c0_i32_1 = arith.constant 0 : i32
    return %arg0, %c0_i32, %c0_i32_0 : i32, i32, i32
  }
  func.func @transform_3(%arg0: i32) -> (i32, i32, i32) {
    %c0_i32 = arith.constant 0 : i32
    %c0_i32_0 = arith.constant 0 : i32
    %c0_i32_1 = arith.constant 0 : i32
    return %arg0, %c0_i32, %c0_i32_0 : i32, i32, i32
  }
  func.func @transform_4(%arg0: i32) -> (i32, i32, i32) {
    %c0_i32 = arith.constant 0 : i32
    %c0_i32_0 = arith.constant 0 : i32
    %c0_i32_1 = arith.constant 0 : i32
    return %arg0, %c0_i32, %c0_i32_0 : i32, i32, i32
  }
  func.func @transform_5(%arg0: i32) -> (i32, i32, i32) {
    %c0_i32 = arith.constant 0 : i32
    %c0_i32_0 = arith.constant 0 : i32
    %c0_i32_1 = arith.constant 0 : i32
    return %arg0, %c0_i32, %c0_i32_0 : i32, i32, i32
  }
}

</mosaic_0001>

<bundles_post_ra>
// kernel: tpu_custom_call.1
= control target key start
LH: loop header
LB: loop body
LE: loop exit
PB: predicated region body
PF: predicated region fallthrough
CT: control target
= control target key end

     0   :  { %s1432_s0 = inlined_call_operand.hbm [shape: f32[4,8,32], index: 0, kind: input, shape index: {}]   ;;  %s1433_s1 = inlined_call_operand.hbm [shape: f32[4,8,32], index: 1, kind: input, shape index: {}]   ;;  %s1434_s2 = inlined_call_operand.hbm [shape: f32[4,8,32], index: 2, kind: input, shape index: {}]   ;;  %s1435_s3 = inlined_call_operand.hbm [shape: f32[4,8,8], index: 3, kind: input, shape index: {}]   ;;  %s1436_s4 = inlined_call_operand.hbm [shape: f32[4,8,32], index: 4, kind: output, shape index: {0}]   ;;  %s1437_s5 = inlined_call_operand.hbm [shape: f32[4,8,8], index: 5, kind: output, shape index: {1}]  }
   0x1   :  { %1442 = sst [smem:[#allocation22_spill]] %s1433_s1 }
   0x2   :  { %11 = vsyncpa [#allocation3], 0 }
   0x3   :  { %13 = vsyncpa [#allocation3 + $0x1], 0 }
   0x4   :  { %14 = vsyncpa [#allocation6], 0 }
   0x5   :  { %16 = vsyncpa [#allocation6 + $0x1], 0 }
   0x6   :  { %17 = vsyncpa [#allocation9], 0 }
   0x7   :  { %19 = vsyncpa [#allocation9 + $0x1], 0 }
   0x8   :  { %20 = vsyncpa [#allocation4], 0 }
   0x9   :  { %22 = vsyncpa [#allocation4 + $0x1], 0 }
   0xa   :  { %23 = vsyncpa [#allocation12], 0 }
   0xb   :  { %25 = vsyncpa [#allocation12 + $0x1], 0  ;;  %s1157_s18 = smov 0   ;;  %s1159_s19 = smov 0  }
   0xc   :  { %s1161_s20 = smov 0   ;;  %s1163_s21 = smov 0  }
   0xd LB: > { %1443 = sst [smem:[#allocation18_spill]] %s1119_s20  ;;  %s1178_s22 = sadd.s32 4294967295, %s1123_s21   ;;  %s1123_s21 = sphi %s1163_s21, %s1456_s21   ;;  %s1119_s20 = sphi %s1161_s20, %s1458_s20   ;;  %s1115_s19 = sphi %s1159_s19, %s1460_s19   ;;  %s1111_s18 = sphi %s1157_s18, %s1459_s18  }
   0xe   : > { %s794_s23 = sadd.s32 4294967294, %s1123_s21   ;;  %s1182_s24 = sadd.s32 1, %s1123_s21  }
   0xf   : > { %1444 = sst [smem:[#allocation19_spill]] %s1182_s24  ;;  %s38_s25 = sadd.s32 1, %s1119_s20 }
  0x10   : > { %s35_s26 = ssub.s32 %s1123_s21, %s1182_s24  ;;  %p45_p0 = scmp.ne.s32.totalorder %s1119_s20, %s1115_s19 }
  0x11   : > { %p36_p1 = scmp.eq.s32.totalorder %s35_s26, 0  ;;  %p46_p2 = scmp.eq.s32.totalorder %s1123_s21, 0 }
  0x12   : > { %p51_p3 = scmp.ne.s32.totalorder %s1115_s19, %s1111_s18  ;;  %p52_p4 = scmp.eq.s32.totalorder %s1178_s22, 0 }
  0x13   : > { %s1194_s27 = scalar_select %p36_p1, %s1119_s20, %s38_s25  }
  0x14   : > { %p47_p5 = por %p46_p2, %p45_p0  ;;  %p1196_p6 = por %p52_p4, %p51_p3 }
  0x15   : > { %1445 = sst [smem:[#allocation20_spill]] %s1194_s27  ;;  %p153_p7 = scmp.eq.s32.totalorder %s1178_s22, 3 }
  0x16   : > { %p159_p8 = scmp.eq.s32.totalorder %s794_s23, 3  ;;  %p855_p9 = scmp.lt.s32.totalorder %s1123_s21, 4 }
  0x17   : > { %p1202_p10 = por %p153_p7, %p45_p0  ;;  %s1211_s6 = sand.u32 1, %s1119_s20  }
  0x18   : > { %p1206_p11 = por %p159_p8, %p51_p3  ;;  %s1214_s7 = sshll.u32 %s1123_s21, 3 }
  0x19   : > { %s1217_s8 = sshll.u32 %s1211_s6, 3  ;;  %p1219_p12 = pnand %p855_p9, %p47_p5 }
  0x1a   : > { %s1448_s30 = scalar_select %p1206_p11, 1, 0 }
  0x1b   : > { %s224_s10 = sand.u32 1, %s1123_s21   ;;  %s1451_s1 = sld [smem:[#allocation22_spill]] }
  0x1c   : > { %1449 = sst [smem:[#allocation21_spill]] %s1448_s30  ;;  %s228_s14 = scalar_lea.vmem [#allocation5], %s1217_s8 }
  0x1d   : > { %s236_s15 = sshll.u32 %s228_s14, 4  ;;  %p805_p13 = scmp.ge.s32.totalorder %s1123_s21, 1  ;;  %s237_s15 = int_to_ptr.vmem [resolvable:$true] %s236_s15 }
  0x1e   : > { %s1230_s17 = scalar_lea.sflag [#allocation6], %s224_s10  ;;  %p901_p1 = pneg %p1219_p12 }
  0x21   : > { %s232_s13 = scalar_lea.hbm %s1451_s1, %s1214_s7  ;;  %s904_s12 = scalar_lea.hbm %s1451_s1, 32 }
  0x22   : > { %s234_s16 = sshll.u32 %s232_s13, 4  ;;  %s235_s16 = int_to_ptr.hbm [resolvable:$true] %s234_s16 }
  0x23   : > { %s897_s23 = sshra.s32 %s235_s16, 4  ;;  %s898_s23 = int_to_ptr.hbm [resolvable:$true] %s897_s23 }
  0x24   : > { %s899_s25 = scalar_lea.hbm %s898_s23, 8  ;;  %p905_p4 = scmp.lt.s32.totalorder %s898_s23, %s1451_s1 }
  0x25   : > { %p900_p0 = scmp.ne.s32.totalorder %s898_s23, %s899_s25  ;;  %p906_p5 = scmp.lt.s32.totalorder %s904_s12, %s899_s25 }
  0x27   : > { %p902_p2 = pnand %p901_p1, %p900_p0  ;;  %p907_p7 = por %p906_p5, %p905_p4 }
  0x29   : > { %p903_p3 = pneg %p902_p2 }
  0x2b   : > { %p908_p8 = pnand %p907_p7, %p903_p3 }
  0x2d   : > { %911 = shalt.err (!%p908_p8)
}
  0x2e   : > { %841 = dma.hbm_to_vmem [thread:$0]  (!%p1219_p12), %s235_s16, 128, %s237_s15, %s1230_s17  }
  0x2f   : > { %p279_p9 = scmp.lt.s32.totalorder %s1123_s21, 5  ;;  %s213_s11 = scalar_lea.hbm %s1432_s0, %s1214_s7 }
  0x30   : > { %s215_s25 = sshll.u32 %s213_s11, 4  ;;  %s209_s12 = scalar_lea.vmem [#allocation2], %s1217_s8  ;;  %s216_s25 = int_to_ptr.hbm [resolvable:$true] %s215_s25 }
  0x31   : > { %p1253_p0 = pnand %p805_p13, %p279_p9  ;;  %s217_s13 = sshll.u32 %s209_s12, 4  ;;  %s218_s13 = int_to_ptr.vmem [resolvable:$true] %s217_s13 }
  0x32   : > { %s206_s14 = scalar_lea.sflag [#allocation3], %s1211_s6  ;;  %s927_s1 = sshra.s32 %s216_s25, 4  ;;  %s928_s1 = int_to_ptr.hbm [resolvable:$true] %s927_s1 }
  0x33   : > { %s929_s27 = scalar_lea.hbm %s928_s1, 8  ;;  %s934_s10 = scalar_lea.hbm %s1432_s0, 32 }
  0x34   : > { %p930_p2 = scmp.ne.s32.totalorder %s928_s1, %s929_s27  ;;  %p935_p13 = scmp.lt.s32.totalorder %s928_s1, %s1432_s0 }
  0x35   : > { %p936_p5 = scmp.lt.s32.totalorder %s934_s10, %s929_s27 }
  0x36   : > { %p932_p3 = pnand %p930_p2, %p901_p1 }
  0x37   : > { %p937_p7 = por %p936_p5, %p935_p13 }
  0x38   : > { %p933_p4 = pneg %p932_p3 }
  0x3a   : > { %p938_p8 = pnand %p937_p7, %p933_p4 }
  0x3c   : > { %941 = shalt.err (!%p938_p8)
}
  0x3d   : > { %838 = dma.hbm_to_vmem [thread:$0]  (!%p1219_p12), %s216_s25, 128, %s218_s13, %s206_s14  }
  0x3e   : > { %s251_s24 = scalar_lea.hbm %s1434_s2, %s1214_s7  ;;  %s247_s15 = scalar_lea.vmem [#allocation7], %s1217_s8 }
  0x3f   : > { %s255_s16 = sshll.u32 %s247_s15, 4  ;;  %s253_s30 = sshll.u32 %s251_s24, 4  ;;  %s256_s16 = int_to_ptr.vmem [resolvable:$true] %s255_s16  ;;  %s254_s30 = int_to_ptr.hbm [resolvable:$true] %s253_s30 }
  0x40   : > { %s957_s1 = sshra.s32 %s254_s30, 4  ;;  %s964_s25 = scalar_lea.hbm %s1434_s2, 32  ;;  %s958_s1 = int_to_ptr.hbm [resolvable:$true] %s957_s1 }
  0x41   : > { %s959_s20 = scalar_lea.hbm %s958_s1, 8  ;;  %p965_p4 = scmp.lt.s32.totalorder %s958_s1, %s1434_s2 }
  0x42   : > { %p960_p9 = scmp.ne.s32.totalorder %s958_s1, %s959_s20  ;;  %p966_p13 = scmp.lt.s32.totalorder %s964_s25, %s959_s20 }
  0x44   : > { %p962_p2 = pnand %p960_p9, %p901_p1  ;;  %p967_p5 = por %p966_p13, %p965_p4 }
  0x46   : > { %p963_p3 = pneg %p962_p2 }
  0x48   : > { %p968_p7 = pnand %p967_p5, %p963_p3 }
  0x4a   : > { %971 = shalt.err (!%p968_p7)
}
  0x4b   : > { %844 = dma.hbm_to_vmem [thread:$0]  (!%p1219_p12), %s254_s30, 128, %s256_s16, %s1230_s17  }
  0x4c   : > { %s270_s11 = scalar_lea.hbm %s1435_s3, %s1214_s7  ;;  %s266_s15 = scalar_lea.vmem [#allocation8], %s1217_s8 }
  0x4d   : > { %s272_s12 = sshll.u32 %s270_s11, 4  ;;  %s274_s27 = sshll.u32 %s266_s15, 4  ;;  %s273_s12 = int_to_ptr.hbm [resolvable:$true] %s272_s12  ;;  %s275_s27 = int_to_ptr.vmem [resolvable:$true] %s274_s27 }
  0x4e   : > { %s263_s1 = scalar_lea.sflag [#allocation9], %s1211_s6  ;;  %s987_s20 = sshra.s32 %s273_s12, 4  ;;  %s988_s20 = int_to_ptr.hbm [resolvable:$true] %s987_s20 }
  0x4f   : > { %s989_s10 = scalar_lea.hbm %s988_s20, 8  ;;  %s994_s17 = scalar_lea.hbm %s1435_s3, 32 }
  0x50   : > { %p990_p8 = scmp.ne.s32.totalorder %s988_s20, %s989_s10  ;;  %p995_p3 = scmp.lt.s32.totalorder %s988_s20, %s1435_s3 }
  0x51   : > { %p996_p4 = scmp.lt.s32.totalorder %s994_s17, %s989_s10 }
  0x52   : > { %p992_p9 = pnand %p990_p8, %p901_p1 }
  0x53   : > { %p997_p13 = por %p996_p4, %p995_p3 }
  0x54   : > { %p993_p2 = pneg %p992_p9 }
  0x56   : > { %p998_p5 = pnand %p997_p13, %p993_p2 }
  0x58   : > { %1001 = shalt.err (!%p998_p5)
}
  0x59   : > { %847 = dma.hbm_to_vmem [thread:$0]  (!%p1219_p12), %s273_s12, 128, %s275_s27, %s263_s1  }
  0x5a   : > { %283 = sbr.rel (%p1253_p0) target bundleno = 2240 (0x8c0), region = 36  ;;  %s1307_s6 = sand.u32 (!%p1253_p0), 1, %s1115_s19  }
  0x5b   : > { %s1310_s8 = sshll.u32 (!%p1253_p0), %s1307_s6, 3  ;;  %s286_s13 = scalar_lea.sflag (!%p1253_p0), [#allocation3], %s1307_s6 }
  0x5c   : > { %s289_s14 = scalar_lea.vmem (!%p1253_p0), [#allocation2], %s1310_s8 }
  0x5f   : > { %1090 = dma.done.wait (%p1196_p6), %s286_s13, 128  }
  0x60   : > { %1092 = vsyncadd (%p1196_p6), %s286_s13, 4294967168  ;;  %s295_s9 = sand.u32 1, %s1178_s22   ;;  %s299_s24 = scalar_lea.vmem [#allocation5], %s1310_s8 }
  0x61   : > { %s296_s23 = scalar_lea.sflag [#allocation6], %s295_s9 }
  0x62   : > { %1094 = dma.done.wait (%p1196_p6), %s296_s23, 256  }
  0x63   : > { %1096 = vsyncadd (%p1196_p6), %s296_s23, 4294967040  ;;  %s309_s26 = scalar_lea.vmem [#allocation7], %s1310_s8  ;;  %s316_s11 = scalar_lea.sflag [#allocation9], %s1307_s6 }
  0x64   : > { %s319_s12 = scalar_lea.vmem [#allocation8], %s1310_s8 }
  0x65   : > { %1098 = dma.done.wait (%p1196_p6), %s316_s11, 128  }
  0x66   : > { %1100 = vsyncadd (%p1196_p6), %s316_s11, 4294967168  ;;  %vm371_vm0 = vcmask 261120   ;;  %v369_v0 = vld [vmem:[%s299_s24] sm:$0xff]  ;;  %v367_v1 = vld [vmem:[%s289_s14] sm:$0xff]  ;;  %vm398_vm1 = vcmask 64512   ;;  %v423_v15 = vlaneseq  ;;  %s819_s28 = sshll.u32 %s1178_s22, 3 }
  0x67   : > { %812 = vmatpush.xpose.msk.msra.mxu0 %vm371_vm0, %v369_v0  ;;  %v368_v2 = vmul.f32 0.17677669, %v367_v1  ;;  %v370_v3 = vld [vmem:[%s319_s12] sm:$0xff]  ;;  %s620_s1 = scalar_lea.hbm %s1437_s5, %s819_s28  ;;  %s366_s20 = scalar_lea.vmem [#allocation11], %s1310_s8 }
  0x68   : > { %v424_v20 = vshrl.u32 %v423_v15, 7  ;;  %v1344_v36 = vand.u32 127, %v423_v15  ;;  %s622_s10 = sshll.u32 %s366_s20, 4  ;;  %s624_s25 = sshll.u32 %s620_s1, 4  ;;  %s623_s10 = int_to_ptr.vmem [resolvable:$true] %s622_s10  ;;  %s625_s25 = int_to_ptr.hbm [resolvable:$true] %s624_s25 }
  0x69   : > { %s596_s30 = scalar_lea.sflag [#allocation12], %s1307_s6  ;;  %s1031_s17 = sshra.s32 %s625_s25, 4  ;;  %s1032_s17 = int_to_ptr.hbm [resolvable:$true] %s1031_s17 }
  0x6a   : > { %813 = vmatmul.msk.f32.vlgmr.msra.gmra.mxu0 %vm371_vm0, %v368_v2  ;;  %vm425_vm6 = vcmp.lt.s32.totalorder %v424_v20, 2  ;;  %s1033_s16 = scalar_lea.hbm %s1032_s17, 8  ;;  %s1037_s13 = scalar_lea.hbm %s1437_s5, 32 }
  0x6b   : > { %p1034_p6 = scmp.ne.s32.totalorder %s1032_s17, %s1033_s16  ;;  %p1038_p0 = scmp.lt.s32.totalorder %s1032_s17, %s1437_s5 }
  0x6c   : > { %p1039_p7 = scmp.lt.s32.totalorder %s1037_s13, %s1033_s16 }
  0x6d   : > { %p1035_p12 = pnand %p1034_p6, %p1202_p10 }
  0x6e   : > { %p1040_p8 = por %p1039_p7, %p1038_p0 }
  0x6f   : > { %p1036_p1 = pneg %p1035_p12 }
  0x71   : > { %p1041_p9 = pnand %p1040_p8, %p1036_p1 }
  0xe7   : > { %v395_v4 = vpop.f32.mrf.mxu0 }
  0xe8   : > { %v1333_v5 = vadd.f32 %v395_v4, %v370_v3 }
  0xea   : > { %v399_v6 = vsel %vm398_vm1, %v1333_v5, -inf }
  0xeb   : > { %400 = vmax.xlane.f32.xlu0 %v399_v6 }
 0x15e   : > { %v401_v7 = vpop.xlane.xlu0 %400 }
 0x15f   : > { %v402_v8 = vsub.f32 %v1333_v5, %v401_v7 }
 0x161   : > { %v403_v9 = vmul.f32 1.442695, %v402_v8 }
 0x163   : > { %891 = vpow2.f32 %v403_v9 }
 0x169   : > { %v892_v10 = vpop.eup %891 }
 0x16a   : > { %v405_v11 = vsel %vm398_vm1, %v892_v10, 0.0 }
 0x16b   : > { %406 = vadd.xlane.f32.xlu0 %v405_v11 }
 0x1de   : > { %v407_v12 = vpop.xlane.xlu0 %406 }
 0x1df   : > { %893 = vrcp.f32 %v407_v12  ;;  %v419_v17 = vand.u32 2147483648, %v407_v12  ;;  %v417_v19 = vand.u32 2147483647, %v407_v12  ;;  %vm413_vm3 = vweird.f32 %v407_v12 }
 0x1e1   : > { %v420_v22 = vor.u32 1.1754944e-38, %v419_v17  ;;  %vm418_vm5 = vcmp.eq.f32.partialorder %v417_v19, 8.507059e+37 }
 0x1e5   : > { %v894_v13 = vpop.eup %893 }
 0x1e6   : > { %v409_v14 = vmul.f32 %v894_v13, %v407_v12  ;;  %vm414_vm2 = vweird.f32 %v894_v13 }
 0x1e7   : > { %vm415_vm4 = vmor %vm413_vm3, %vm414_vm2 }
 0x1e8   : > { %v410_v16 = vsub.f32 1.0, %v409_v14 }
 0x1ea   : > { %v411_v18 = vmul.f32 %v894_v13, %v410_v16 }
 0x1ec   : > { %v412_v21 = vadd.f32 %v894_v13, %v411_v18 }
 0x1ee   : > { %v416_v23 = vsel %vm415_vm4, %v894_v13, %v412_v21 }
 0x1ef   : > { %v421_v24 = vsel %vm418_vm5, %v420_v22, %v416_v23 }
 0x1f0   : > { %v1339_v25 = vmul.f32 %v892_v10, %v421_v24 }
 0x1f2   : > { %v428_v26 = vsel %vm425_vm6, %v1339_v25, 0.0 }
 0x1f3   : > { %v429_v27 = vsel %vm398_vm1, %v428_v26, 0.0 }
 0x1f4   : > { %v430_v28 = vrot.slane %v429_v27, 4 }
 0x1f6   : > { %v431_v29 = vadd.f32 %v430_v28, %v429_v27 }
 0x1f8   : > { %v432_v30 = vrot.slane %v431_v29, 2 }
 0x1fa   : > { %v433_v31 = vadd.f32 %v432_v30, %v431_v29 }
 0x1fc   : > { %v434_v32 = vrot.slane %v433_v31, 1 }
 0x1fe   : > { %v435_v33 = vadd.f32 %v434_v32, %v433_v31 }
 0x200   : > { %vm436_vm7 = vcmp.ne.f32.partialorder %v435_v33, %v435_v33 }
 0x201   : > { %v437_v34 = vsel %vm436_vm7, -3.4028235e+38, %v435_v33 }
 0x202   : > { %v440_v35 = vsel %vm398_vm1, %v437_v34, -inf }
 0x203   : > { %441 = vmax.xlane.f32.xlu1 %v440_v35 }
 0x276   : > { %v442_v37 = vpop.xlane.xlu1 %441 }
 0x277   : > { %vm443_vm8 = vcmp.eq.f32.partialorder %v437_v34, %v442_v37 }
 0x278   : > { %v444_v38 = vsel %vm443_vm8, %v1344_v36, 8 }
 0x279   : > { %v445_v39 = vsel %vm398_vm1, %v444_v38, 2147483647 }
 0x27a   : > { %v447_v40 = vshra.s32 %v445_v39, 16  ;;  %v446_v42 = vand.u32 65535, %v445_v39  ;;  %v1126_v39 = vmov 0.0  }
 0x27c   : > { %v449_v41 = vcvt.s32.f32 %v447_v40  ;;  %v448_v44 = vcvt.s32.f32 %v446_v42 }
 0x27e   : > { %450 = vmin.xlane.f32.xlu1 %v449_v41 }
 0x2f1   : > { %v451_v43 = vpop.xlane.xlu1 %450 }
 0x2f2   : > { %vm452_vm9 = vcmp.eq.f32.partialorder %v449_v41, %v451_v43  ;;  %v457_v46 = vcvt.f32.s32 %v451_v43 }
 0x2f3   : > { %v453_v45 = vsel %vm452_vm9, %v448_v44, inf  ;;  %vm1125_vm9 = vmmov 1  }
 0x2f4   : > { %454 = vmin.xlane.f32.xlu2 %v453_v45  ;;  %v458_v48 = vshll.u32 %v457_v46, 16 }
 0x367   : > { %v455_v47 = vpop.xlane.xlu2 %454 }
 0x368   : > { %v456_v49 = vcvt.f32.s32 %v455_v47 }
 0x36a   : > { %v459_v50 = vadd.s32 %v458_v48, %v456_v49 }
 0x36c   : > { %vm460_vm10 = vcmp.eq.s32.totalorder %v1344_v36, %v459_v50 }
 0x36d   : > { %v461_v51 = vsel %vm460_vm10, -inf, %v437_v34 }
 0x36e   : > { %v462_v52 = vsel %vm398_vm1, %v461_v51, -inf }
 0x36f   : > { %463 = vmax.xlane.f32.xlu2 %v462_v52 }
 0x3e2   : > { %v464_v53 = vpop.xlane.xlu2 %463 }
 0x3e3   : > { %vm465_vm11 = vcmp.eq.f32.partialorder %v461_v51, %v464_v53 }
 0x3e4   : > { %v466_v54 = vsel %vm465_vm11, %v1344_v36, 8  ;;  %vm536_vm11 = vcmp.gt.f32.partialorder %v1333_v5, -32752.0 }
 0x3e5   : > { %v467_v55 = vsel %vm398_vm1, %v466_v54, 2147483647 }
 0x3e6   : > { %v469_v56 = vshra.s32 %v467_v55, 16  ;;  %v468_v58 = vand.u32 65535, %v467_v55 }
 0x3e8   : > { %v471_v57 = vcvt.s32.f32 %v469_v56  ;;  %v470_v60 = vcvt.s32.f32 %v468_v58 }
 0x3ea   : > { %472 = vmin.xlane.f32.xlu0 %v471_v57 }
 0x45d   : > { %v473_v59 = vpop.xlane.xlu0 %472 }
 0x45e   : > { %vm474_vm12 = vcmp.eq.f32.partialorder %v471_v57, %v473_v59  ;;  %v479_v62 = vcvt.f32.s32 %v473_v59 }
 0x45f   : > { %v475_v61 = vsel %vm474_vm12, %v470_v60, inf }
 0x460   : > { %476 = vmin.xlane.f32.xlu1 %v475_v61  ;;  %v480_v0 = vshll.u32 %v479_v62, 16 }
 0x4d3   : > { %v477_v63 = vpop.xlane.xlu1 %476 }
 0x4d4   : > { %v478_v1 = vcvt.f32.s32 %v477_v63 }
 0x4d6   : > { %v481_v2 = vadd.s32 %v480_v0, %v478_v1 }
 0x4d8   : > { %vm482_vm13 = vcmp.eq.s32.totalorder %v1344_v36, %v481_v2 }
 0x4d9   : > { %v484_v3 = vsel %vm482_vm13, -inf, %v461_v51  ;;  %vm483_vm3 = vmor %vm460_vm10, %vm482_vm13 }
 0x4da   : > { %v485_v4 = vsel %vm398_vm1, %v484_v3, -inf }
 0x4db   : > { %486 = vmax.xlane.f32.xlu2 %v485_v4 }
 0x54e   : > { %v487_v6 = vpop.xlane.xlu2 %486 }
 0x54f   : > { %vm488_vm14 = vcmp.eq.f32.partialorder %v484_v3, %v487_v6 }
 0x550   : > { %v489_v7 = vsel %vm488_vm14, %v1344_v36, 8 }
 0x551   : > { %v490_v8 = vsel %vm398_vm1, %v489_v7, 2147483647 }
 0x552   : > { %v492_v9 = vshra.s32 %v490_v8, 16  ;;  %v491_v11 = vand.u32 65535, %v490_v8 }
 0x554   : > { %v494_v10 = vcvt.s32.f32 %v492_v9  ;;  %v493_v13 = vcvt.s32.f32 %v491_v11 }
 0x556   : > { %495 = vmin.xlane.f32.xlu0 %v494_v10 }
 0x5c9   : > { %v496_v12 = vpop.xlane.xlu0 %495 }
 0x5ca   : > { %vm497_vm15 = vcmp.eq.f32.partialorder %v494_v10, %v496_v12  ;;  %v502_v15 = vcvt.f32.s32 %v496_v12 }
 0x5cb   : > { %v498_v14 = vsel %vm497_vm15, %v493_v13, inf }
 0x5cc   : > { %499 = vmin.xlane.f32.xlu1 %v498_v14  ;;  %v503_v17 = vshll.u32 %v502_v15, 16 }
 0x63f   : > { %v500_v16 = vpop.xlane.xlu1 %499 }
 0x640   : > { %v501_v18 = vcvt.f32.s32 %v500_v16 }
 0x642   : > { %v504_v19 = vadd.s32 %v503_v17, %v501_v18 }
 0x644   : > { %vm505_vm2 = vcmp.eq.s32.totalorder %v1344_v36, %v504_v19 }
 0x645   : > { %v507_v20 = vsel %vm505_vm2, -inf, %v484_v3  ;;  %vm1365_vm4 = vmor %vm483_vm3, %vm505_vm2 }
 0x646   : > { %v508_v22 = vsel %vm398_vm1, %v507_v20, -inf }
 0x647   : > { %509 = vmax.xlane.f32.xlu2 %v508_v22 }
 0x6ba   : > { %v510_v23 = vpop.xlane.xlu2 %509 }
 0x6bb   : > { %vm511_vm5 = vcmp.eq.f32.partialorder %v507_v20, %v510_v23 }
 0x6bc   : > { %v512_v24 = vsel %vm511_vm5, %v1344_v36, 8 }
 0x6bd   : > { %v513_v26 = vsel %vm398_vm1, %v512_v24, 2147483647 }
 0x6be   : > { %v515_v27 = vshra.s32 %v513_v26, 16  ;;  %v514_v29 = vand.u32 65535, %v513_v26 }
 0x6c0   : > { %v517_v28 = vcvt.s32.f32 %v515_v27  ;;  %v516_v31 = vcvt.s32.f32 %v514_v29 }
 0x6c2   : > { %518 = vmin.xlane.f32.xlu0 %v517_v28 }
 0x735   : > { %v519_v30 = vpop.xlane.xlu0 %518 }
 0x736   : > { %vm520_vm6 = vcmp.eq.f32.partialorder %v517_v28, %v519_v30  ;;  %v525_v33 = vcvt.f32.s32 %v519_v30 }
 0x737   : > { %v521_v32 = vsel %vm520_vm6, %v516_v31, inf }
 0x738   : > { %522 = vmin.xlane.f32.xlu1 %v521_v32  ;;  %v526_v35 = vshll.u32 %v525_v33, 16 }
 0x7ab   : > { %v523_v34 = vpop.xlane.xlu1 %522 }
 0x7ac   : > { %v524_v37 = vcvt.f32.s32 %v523_v34 }
 0x7ae   : > { %v527_v38 = vadd.s32 %v526_v35, %v524_v37 }
 0x7b0   : > { %vm528_vm7 = vcmp.eq.s32.totalorder %v1344_v36, %v527_v38  ;;  %v564_v36 = vld [vmem:[%s309_s26] sm:$0xff] }
 0x7b1   : > { %vm529_vm8 = vmor %vm1365_vm4, %vm528_vm7  ;;  %583 = vmatpush.msra.mxu1 %v564_v36 }
 0x7b2   : > { %vm535_vm10 = vmxor %vm529_vm8, %vm1125_vm9  ;;  %v814_v40 = vsel %vm529_vm8, 1.0, %v1126_v39 }
 0x7b3   : > { %vm537_vm12 = vmand %vm535_vm10, %vm536_vm11  ;;  %v534_v41 = vmul.f32 %v814_v40, %v1339_v25 }
 0x7b4   : > { %v815_v42 = vsel %vm537_vm12, 1.0, %v1126_v39 }
 0x7b5   : > { %v545_v43 = vsel %vm398_vm1, %v815_v42, 0.0  ;;  %v540_v44 = vsel %vm398_vm1, %v534_v41, 0.0 }
 0x7b6   : > { %546 = vadd.xlane.f32.xlu2 %v545_v43  ;;  %541 = vadd.xlane.f32.xlu0 %v540_v44 }
 0x829   : > { %v547_v45 = vpop.xlane.xlu2 %546  ;;  %v542_v5 = vpop.xlane.xlu0 %541 }
 0x82a   : > { %895 = vrcp.f32 %v547_v45  ;;  %v559_v49 = vand.u32 2147483648, %v547_v45  ;;  %v557_v25 = vand.u32 2147483647, %v547_v45  ;;  %v543_v51 = vsub.f32 1.0, %v542_v5 }
 0x82b   : > { %vm553_vm14 = vweird.f32 %v547_v45 }
 0x82c   : > { %v560_v53 = vor.u32 1.1754944e-38, %v559_v49  ;;  %vm558_vm2 = vcmp.eq.f32.partialorder %v557_v25, 8.507059e+37  ;;  %v544_v55 = vmul.f32 %v815_v42, %v543_v51 }
 0x830   : > { %v896_v46 = vpop.eup %895 }
 0x831   : > { %v549_v47 = vmul.f32 %v896_v46, %v547_v45  ;;  %vm554_vm13 = vweird.f32 %v896_v46 }
 0x832   : > { %vm555_vm15 = vmor %vm553_vm14, %vm554_vm13 }
 0x833   : > { %v550_v48 = vsub.f32 1.0, %v549_v47 }
 0x835   : > { %v551_v50 = vmul.f32 %v896_v46, %v550_v48 }
 0x837   : > { %v552_v52 = vadd.f32 %v896_v46, %v551_v50 }
 0x839   : > { %v556_v54 = vsel %vm555_vm15, %v896_v46, %v552_v52 }
 0x83a   : > { %v561_v56 = vsel %vm558_vm2, %v560_v53, %v556_v54 }
 0x83b   : > { %v562_v57 = vmul.f32 %v561_v56, %v544_v55 }
 0x83d   : > { %v563_v58 = vadd.f32 %v562_v57, %v534_v41 }
 0x83f   : > { %816 = vmatmul.msk.f32.vlgmr.msra.gmra.mxu1 %vm398_vm1, %v563_v58  ;;  %589 = vst.msk [vmem:[%s366_s20] sm:$0xff] %vm398_vm1, %v563_v58 }
 0x840   : > { %1044 = shalt.err (!%p1041_p9)
}
 0x841   : > { %832 = dma.vmem_to_hbm [thread:$0]  (%p1202_p10), %s623_s10, 128, %s625_s25, %s596_s30  }
 0x842   : > { %s606_s26 = scalar_lea.hbm %s1436_s4, %s819_s28  ;;  %s359_s11 = scalar_lea.vmem [#allocation10], %s1310_s8 }
 0x843   : > { %s608_s12 = sshll.u32 %s359_s11, 4  ;;  %s610_s15 = sshll.u32 %s606_s26, 4  ;;  %s609_s12 = int_to_ptr.vmem [resolvable:$true] %s608_s12  ;;  %s611_s15 = int_to_ptr.hbm [resolvable:$true] %s610_s15 }
 0x844   : > { %s591_s27 = scalar_lea.sflag [#allocation4], %s1307_s6  ;;  %s1059_s1 = sshra.s32 %s611_s15, 4  ;;  %s1060_s1 = int_to_ptr.hbm [resolvable:$true] %s1059_s1 }
 0x845   : > { %s1061_s20 = scalar_lea.hbm %s1060_s1, 8  ;;  %s1065_s28 = scalar_lea.hbm %s1436_s4, 32 }
 0x846   : > { %p1062_p2 = scmp.ne.s32.totalorder %s1060_s1, %s1061_s20  ;;  %p1066_p13 = scmp.lt.s32.totalorder %s1060_s1, %s1436_s4 }
 0x847   : > { %p1067_p5 = scmp.lt.s32.totalorder %s1065_s28, %s1061_s20 }
 0x848   : > { %p1063_p3 = pnand %p1062_p2, %p1202_p10 }
 0x849   : > { %p1068_p6 = por %p1067_p5, %p1066_p13 }
 0x84a   : > { %p1064_p4 = pneg %p1063_p3 }
 0x84c   : > { %p1069_p12 = pnand %p1068_p6, %p1064_p4 }
 0x8bc   : > { %v585_v59 = vpop.f32.mrf.mxu1 }
 0x8bd   : > { %588 = vst.msk [vmem:[%s359_s11] sm:$0xff] %vm371_vm0, %v585_v59 }
 0x8be   : > { %1072 = shalt.err (!%p1069_p12)
}
 0x8bf   : > { %831 = dma.vmem_to_hbm [thread:$0]  (%p1202_p10), %s609_s12, 128, %s611_s15, %s591_s27  }
 0x8c0 PF: > { %p856_p1 = scmp.ge.s32.totalorder %s1123_s21, 2  ;;  %s636_s17 = sand.u32 1, %s1111_s18  }
 0x8c1   : > { %s637_s16 = scalar_lea.sflag [#allocation4], %s636_s17 }
 0x8c2   : > { %p849_p0 = pnand %p856_p1, %p1206_p11 }
 0x8c4   : > { %p850_p7 = pneg %p849_p0 }
 0x8c6   : > { %1102 = dma.done.wait (%p850_p7), %s637_s16, 128  }
 0x8c7   : > { %1104 = vsyncadd (%p850_p7), %s637_s16, 4294967168  ;;  %s647_s22 = scalar_lea.sflag [#allocation12], %s636_s17 }
 0x8c8   : > { %1106 = dma.done.wait (%p850_p7), %s647_s22, 128  }
 0x8c9   : > { %1108 = vsyncadd (%p850_p7), %s647_s22, 4294967168  ;;  %s1456_s21 = sld [smem:[#allocation19_spill]]  ;;  %s1459_s18 = smov %s1115_s19 }
 0x8ca   : > { %s1457_s7 = sld [smem:[#allocation18_spill]] }
 0x8cb   : > { %s1458_s20 = sld [smem:[#allocation20_spill]] }
 0x8cf   : > { %p28_p10 = scmp.ge.s32.totalorder %s1456_s21, 6  }
 0x8d0   : > { %s1460_s19 = smov %s1457_s7 }
 0x8d1   :  { %30 = sbr.rel (!%p28_p10) target bundleno = 13 (0xd), region = 135 }
 0x8d6   :  { %653 = vsyncpa [#allocation3], 1 }
 0x8d7   :  { %655 = vsyncpa [#allocation3 + $0x1], 1 }
 0x8d8   :  { %656 = vsyncpa [#allocation6], 1 }
 0x8d9   :  { %658 = vsyncpa [#allocation6 + $0x1], 1 }
 0x8da   :  { %659 = vsyncpa [#allocation9], 1 }
 0x8db   :  { %661 = vsyncpa [#allocation9 + $0x1], 1 }
 0x8dc   :  { %662 = vsyncpa [#allocation4], 1 }
 0x8dd   :  { %664 = vsyncpa [#allocation4 + $0x1], 1 }
 0x8de   :  { %665 = vsyncpa [#allocation12], 1 }
 0x8df   :  { %667 = vsyncpa [#allocation12 + $0x1], 1 }

</bundles_post_ra>
